<compile_context>
chip_gen: v6e
topology: v6e:2x2x1
jax: 0.10.0
libtpu: 0.0.40
codegen_flags: <defaults>
</compile_context>

<pallas_src>
import jax
import jax.numpy as jnp
from jax.experimental import pallas as pl
from jax.experimental.pallas import tpu as pltpu

D_FEAT = 384
NUM_GENUS = 1
NUM_ACTIONS = 10
LANES = 128  # lane-dense padded output / fused-weight width


def _round_up(n, m):
    return ((n + m - 1) // m) * m


def cft_head_kernel(x_ref, w_ref, b_ref, out_ref):
    """One fused MXU matmul + masked log-softmax, lane-dense output.

    x_ref:   [tb, 384]   (f32 or bf16)
    w_ref:   [384, 128]  fused weight (lanes 1:11 = action head, rest zero)
    b_ref:   [1, 128]    fused bias (f32)
    out_ref: [tb, 128]   f32; lane 0 = genus log-softmax (== 0),
                          lanes 1:11 = action log-softmax, rest 0.
    """
    x = x_ref[...]
    # Single fused matmul, f32 accumulation on the MXU.
    s = jnp.dot(x, w_ref[...], preferred_element_type=jnp.float32)
    s = s + b_ref[...]

    # Action logits live in lanes [NUM_GENUS, NUM_GENUS + NUM_ACTIONS).
    lane = jax.lax.broadcasted_iota(jnp.int32, s.shape, dimension=1)
    act_mask = (lane >= NUM_GENUS) & (lane < NUM_GENUS + NUM_ACTIONS)

    # Masked log-softmax over the 10 action lanes (f32 epilogue; cheap).
    masked = jnp.where(act_mask, s, -jnp.inf)
    m = jnp.max(masked, axis=-1, keepdims=True)
    y = s - m
    p = jnp.where(act_mask, jnp.exp(y), 0.0)
    lse = jnp.log(jnp.sum(p, axis=-1, keepdims=True))
    act_ls = y - lse

    # Lane 0 (genus): log-softmax over a single class is identically 0.
    # Padding lanes are also written as 0 -> one unmasked lane-dense store.
    out_ref[...] = jnp.where(act_mask, act_ls, 0.0).astype(out_ref.dtype)


def cft_forward(x, w1, b1, w2, b2, *, block_b=512, compute_dtype=jnp.float32):
    """CFT head forward.  Returns (log_softmax_genus [B,1], log_softmax_actions [B,10]).

    w1/b1 (the genus Linear) are accepted for API parity with the PyTorch
    module but are mathematically dead: LogSoftmax over one class is 0.
    """
    del w1, b1  # genus head output is constant 0 regardless of its parameters
    B, D = x.shape
    assert D == D_FEAT

    # Fused lane-dense weight/bias.
    w_fused = jnp.zeros((D_FEAT, LANES), dtype=compute_dtype)
    w_fused = w_fused.at[:, NUM_GENUS:NUM_GENUS + NUM_ACTIONS].set(
        w2.astype(compute_dtype))
    b_fused = jnp.zeros((1, LANES), dtype=jnp.float32)
    b_fused = b_fused.at[:, NUM_GENUS:NUM_GENUS + NUM_ACTIONS].set(
        b2.astype(jnp.float32))

    # Batch tile: big (default 512), multiple of 16 (bf16 sublane packing),
    # cdiv + zero-pad so any batch size works.
    tb = min(_round_up(block_b, 16), _round_up(B, 16))
    steps = pl.cdiv(B, tb)
    b_pad = steps * tb

    x_p = x.astype(compute_dtype)
    if b_pad != B:
        x_p = jnp.pad(x_p, ((0, b_pad - B), (0, 0)))

    out = pl.pallas_call(
        cft_head_kernel,
        out_shape=jax.ShapeDtypeStruct((b_pad, LANES), jnp.float32),
        grid_spec=pl.GridSpec(
            grid=(steps,),
            in_specs=[
                pl.BlockSpec((tb, D_FEAT), lambda i: (i, 0)),   # x: streamed
                pl.BlockSpec((D_FEAT, LANES), lambda i: (0, 0)),  # fused W: resident
                pl.BlockSpec((1, LANES), lambda i: (0, 0)),       # fused b: resident
            ],
            out_specs=pl.BlockSpec((tb, LANES), lambda i: (i, 0)),
        ),
        compiler_params=pltpu.CompilerParams(
            # Batch tiles are independent -> shard across TensorCores (v7x).
            dimension_semantics=("parallel",),
        ),
    )(x_p, w_fused, b_fused)

    out_gen = out[:B, :NUM_GENUS]                                # identically 0
    out_act = out[:B, NUM_GENUS:NUM_GENUS + NUM_ACTIONS]
    return out_gen, out_act


def reference(x, w1, b1, w2, b2):
    gen = x @ w1 + b1
    act = x @ w2 + b2
    return jax.nn.log_softmax(gen, axis=1), jax.nn.log_softmax(act, axis=1)


if __name__ == "__main__":
    key = jax.random.PRNGKey(0)
    kx, k1, k2, k3, k4 = jax.random.split(key, 5)

    # Non-multiple-of-tile batch to exercise the cdiv/padding path.
    B = 200
    # Features (stand-in for CrossFusionTransformer output of width 384).
    x = jax.random.normal(kx, (B, D_FEAT), dtype=jnp.float32)

    # Linear(384, 1) and Linear(384, 10), stored pre-transposed as [in, out].
    w1 = jax.random.normal(k1, (D_FEAT, NUM_GENUS), dtype=jnp.float32) * 0.02
    b1 = jax.random.normal(k2, (1, NUM_GENUS), dtype=jnp.float32) * 0.02
    w2 = jax.random.normal(k3, (D_FEAT, NUM_ACTIONS), dtype=jnp.float32) * 0.02
    b2 = jax.random.normal(k4, (1, NUM_ACTIONS), dtype=jnp.float32) * 0.02

    ref_gen, ref_act = reference(x, w1, b1, w2, b2)

    # f32 path, single large tile (default block_b=512 -> 1 grid step here).
    out_gen, out_act = cft_forward(x, w1, b1, w2, b2)
    jax.block_until_ready((out_gen, out_act))
    assert out_gen.shape == (B, NUM_GENUS)
    assert out_act.shape == (B, NUM_ACTIONS)
    assert jnp.allclose(out_gen, ref_gen, atol=1e-5, rtol=1e-5)
    assert jnp.allclose(out_act, ref_act, atol=1e-5, rtol=1e-5)

    # f32 path, multi-step grid with a remainder tile (padding exercised).
    g2, a2 = cft_forward(x, w1, b1, w2, b2, block_b=64)
    jax.block_until_ready((g2, a2))
    assert jnp.allclose(g2, ref_gen, atol=1e-5, rtol=1e-5)
    assert jnp.allclose(a2, ref_act, atol=1e-5, rtol=1e-5)

    # bf16-streaming path (halves HBM bytes for x; f32 MXU accumulation).
    g3, a3 = cft_forward(x, w1, b1, w2, b2, compute_dtype=jnp.bfloat16)
    jax.block_until_ready((g3, a3))
    assert jnp.allclose(g3, ref_gen, atol=1e-5, rtol=1e-5)  # genus output is exactly 0
    assert jnp.allclose(a3, ref_act, atol=3e-2, rtol=3e-2)

    print("KERNEL_OK")
</pallas_src>

<mosaic_0001>
module attributes {stable_mosaic.version = 11 : i64} {
  func.func @cft_head_kernel(%arg0: i32, %arg1: memref<208x384xf32, #tpu.memory_space<vmem>>, %arg2: memref<384x128xf32, #tpu.memory_space<vmem>>, %arg3: memref<1x128xf32, #tpu.memory_space<vmem>>, %arg4: memref<208x128xf32, #tpu.memory_space<vmem>>) attributes {dimension_semantics = [#tpu.dimension_semantics<parallel>], iteration_bounds = array<i64: 1>, scalar_prefetch = 0 : i64, scratch_operands = 0 : i64, tpu.core_type = #tpu.core_type<tc>, window_params = [{transform_indices = @transform_0, window_bounds = array<i64: 208, 384>}, {pipeline_mode = #tpu.pipeline_mode<synchronous>, transform_indices = @transform_1, window_bounds = array<i64: 384, 128>}, {pipeline_mode = #tpu.pipeline_mode<synchronous>, transform_indices = @transform_2, window_bounds = array<i64: 1, 128>}, {transform_indices = @transform_3, window_bounds = array<i64: 208, 128>}]} {
    %c0 = arith.constant 0 : index
    %c0_0 = arith.constant 0 : index
    %0 = vector.load %arg1[%c0, %c0_0] : memref<208x384xf32, #tpu.memory_space<vmem>>, vector<208x384xf32>
    %c0_1 = arith.constant 0 : index
    %c0_2 = arith.constant 0 : index
    %1 = vector.load %arg2[%c0_1, %c0_2] : memref<384x128xf32, #tpu.memory_space<vmem>>, vector<384x128xf32>
    %cst = arith.constant dense<0.000000e+00> : vector<208x128xf32>
    %2 = tpu.matmul %0, %1, %cst {dimension_numbers = #tpu.dot_dimension_numbers<[1], [0], [0], [1], [0, 0, 1, 1], [], []>} : vector<208x384xf32>, vector<384x128xf32>, vector<208x128xf32> -> vector<208x128xf32>
    %c0_3 = arith.constant 0 : index
    %c0_4 = arith.constant 0 : index
    %3 = vector.load %arg3[%c0_3, %c0_4] : memref<1x128xf32, #tpu.memory_space<vmem>>, vector<1x128xf32>
    %4 = vector.broadcast %3 : vector<1x128xf32> to vector<208x128xf32>
    %5 = arith.addf %2, %4 : vector<208x128xf32>
    %6 = tpu.iota {dimensions = array<i32: 1>} : vector<208x128xi32>
    %c1_i32 = arith.constant 1 : i32
    %7 = vector.broadcast %c1_i32 : i32 to vector<208x128xi32>
    %8 = arith.cmpi sge, %6, %7 : vector<208x128xi32>
    %c11_i32 = arith.constant 11 : i32
    %9 = vector.broadcast %c11_i32 : i32 to vector<208x128xi32>
    %10 = arith.cmpi slt, %6, %9 : vector<208x128xi32>
    %11 = arith.andi %8, %10 : vector<208x128xi1>
    %cst_5 = arith.constant 0xFF800000 : f32
    %12 = vector.broadcast %cst_5 : f32 to vector<208x128xf32>
    %13 = arith.select %11, %5, %12 : vector<208x128xi1>, vector<208x128xf32>
    %cst_6 = arith.constant dense<0xFF800000> : vector<208xf32>
    %14 = vector.multi_reduction <maximumf>, %13, %cst_6 [1] : vector<208x128xf32> to vector<208xf32>
    %15 = vector.shape_cast %14 : vector<208xf32> to vector<208x1xf32>
    %16 = vector.broadcast %15 : vector<208x1xf32> to vector<208x128xf32>
    %17 = arith.subf %5, %16 : vector<208x128xf32>
    %18 = math.exp %17 : vector<208x128xf32>
    %cst_7 = arith.constant 0.000000e+00 : f32
    %19 = vector.broadcast %cst_7 : f32 to vector<208x128xf32>
    %20 = arith.select %11, %18, %19 : vector<208x128xi1>, vector<208x128xf32>
    %cst_8 = arith.constant dense<0.000000e+00> : vector<208xf32>
    %21 = vector.multi_reduction <add>, %20, %cst_8 [1] : vector<208x128xf32> to vector<208xf32>
    %22 = vector.shape_cast %21 : vector<208xf32> to vector<208x1xf32>
    %23 = math.log %22 : vector<208x1xf32>
    %24 = vector.broadcast %23 : vector<208x1xf32> to vector<208x128xf32>
    %25 = arith.subf %17, %24 : vector<208x128xf32>
    %cst_9 = arith.constant 0.000000e+00 : f32
    %26 = vector.broadcast %cst_9 : f32 to vector<208x128xf32>
    %27 = arith.select %11, %25, %26 : vector<208x128xi1>, vector<208x128xf32>
    %c0_10 = arith.constant 0 : index
    %c0_11 = arith.constant 0 : index
    %28 = vector.load %arg4[%c0_10, %c0_11] : memref<208x128xf32, #tpu.memory_space<vmem>>, vector<208x128xf32>
    tpu.vector_store %arg4[%c0_10, %c0_11], %27 {strides = array<i32>} : memref<208x128xf32, #tpu.memory_space<vmem>>, vector<208x128xf32>,
    return
  }
  func.func @transform_0(%arg0: i32) -> (i32, i32) {
    %c0_i32 = arith.constant 0 : i32
    %c0_i32_0 = arith.constant 0 : i32
    return %arg0, %c0_i32 : i32, i32
  }
  func.func @transform_1(%arg0: i32) -> (i32, i32) {
    %c0_i32 = arith.constant 0 : i32
    %c0_i32_0 = arith.constant 0 : i32
    %c0_i32_1 = arith.constant 0 : i32
    return %c0_i32, %c0_i32_0 : i32, i32
  }
  func.func @transform_2(%arg0: i32) -> (i32, i32) {
    %c0_i32 = arith.constant 0 : i32
    %c0_i32_0 = arith.constant 0 : i32
    %c0_i32_1 = arith.constant 0 : i32
    return %c0_i32, %c0_i32_0 : i32, i32
  }
  func.func @transform_3(%arg0: i32) -> (i32, i32) {
    %c0_i32 = arith.constant 0 : i32
    %c0_i32_0 = arith.constant 0 : i32
    return %arg0, %c0_i32 : i32, i32
  }
}

</mosaic_0001>

<bundles_post_ra>
// kernel: tpu_custom_call.1
= control target key start
LH: loop header
LB: loop body
LE: loop exit
PB: predicated region body
PF: predicated region fallthrough
CT: control target
= control target key end

     0   :  { %8 = vsyncpa [#allocation3], 0  ;;  %s1719_s0 = inlined_call_operand.hbm [shape: f32[208,384], index: 0, kind: input, shape index: {}]   ;;  %s1720_s1 = inlined_call_operand.hbm [shape: f32[384,128], index: 1, kind: input, shape index: {}]   ;;  %s1721_s2 = inlined_call_operand.vmem [shape: f32[1,128], index: 2, kind: input, shape index: {}]   ;;  %s1722_s3 = inlined_call_operand.hbm [shape: f32[208,128], index: 3, kind: output, shape index: {}]  }
   0x1   :  { %9 = vsyncpa [#allocation6], 0 }
   0x2   :  { %10 = vsyncpa [#allocation4], 0  ;;  %s1245_s12 = smov [#allocation2]  }
   0x3   :  { %s16_s13 = sshll.u32 %s1245_s12, 4  ;;  %s17_s13 = int_to_ptr.vmem [resolvable:$true] %s16_s13 }
   0x4   :  { %s1187_s14 = scalar_lea.vmem %s17_s13, 9984  ;;  %p1192_p1 = scmp.lt.s32.totalorder %s17_s13, %s17_s13 }
   0x5   :  { %p1188_p0 = scmp.ne.s32.totalorder %s17_s13, %s1187_s14  ;;  %p1193_p2 = scmp.lt.s32.totalorder %s1187_s14, %s1187_s14 }
   0x7   :  { %p1194_p3 = por %p1193_p2, %p1192_p1 }
   0x9   :  { %p1195_p4 = pnand %p1194_p3, %p1188_p0 }
   0xb   :  { %1198 = shalt.err (!%p1195_p4)
}
   0xc   :  { %s1246_s15 = smov 384   ;;  %s1247_s16 = smov 24  }
   0xd   :  { %22 = dma.hbm_to_vmem [thread:$0]  %s1719_s0, 9984, %s17_s13, [#allocation3], %s1246_s15, %s1246_s15, %s1247_s16  }
   0xe   :  { %s1248_s19 = smov [#allocation5]  }
   0xf   :  { %s28_s20 = sshll.u32 %s1248_s19, 4  ;;  %s29_s20 = int_to_ptr.vmem [resolvable:$true] %s28_s20 }
  0x10   :  { %s1207_s21 = scalar_lea.vmem %s29_s20, 6144  ;;  %p1212_p6 = scmp.lt.s32.totalorder %s29_s20, %s29_s20 }
  0x11   :  { %p1208_p5 = scmp.ne.s32.totalorder %s29_s20, %s1207_s21  ;;  %p1213_p7 = scmp.lt.s32.totalorder %s1207_s21, %s1207_s21 }
  0x13   :  { %p1214_p8 = por %p1213_p7, %p1212_p6 }
  0x15   :  { %p1215_p9 = pnand %p1214_p8, %p1208_p5 }
  0x17   :  { %1218 = shalt.err (!%p1215_p9)
}
  0x18   :  { %s1249_s22 = smov 128   ;;  %s1250_s23 = smov 8  }
  0x19   :  { %34 = dma.hbm_to_vmem [thread:$0]  %s1720_s1, 6144, %s29_s20, [#allocation6], %s1249_s22, %s1249_s22, %s1250_s23  }
  0x1a   :  { %1239 = dma.done.wait [#allocation3], 9984  }
  0x1b   :  { %1240 = vsyncadd [#allocation3], 4294957312 }
  0x1c   :  { %1241 = dma.done.wait [#allocation6], 6144  }
  0x1d   :  { %1242 = vsyncadd [#allocation6], 4294961152  ;;  %v1251_v0 = vmov 0.0   ;;  %v136_v1 = vld [vmem:[#allocation5 + $0x78] sm:$0xff]  ;;  %v135_v2 = vld [vmem:[#allocation5 + $0x70] sm:$0xff] }
  0x1e   :  { %176 = vmatprep.subr.mxu0 %v1251_v0  ;;  %v134_v3 = vld [vmem:[#allocation5 + $0x68] sm:$0xff]  ;;  %v133_v4 = vld [vmem:[#allocation5 + $0x60] sm:$0xff]  ;;  %v168_v5 = vld [vmem:[#allocation5 + $0x178] sm:$0xff] }
  0x1f   :  { %177 = vmatpush1.msra.mxu0 %v136_v1  ;;  %v132_v6 = vld [vmem:[#allocation5 + $0x58] sm:$0xff]  ;;  %996 = vmatprep.subr.mxu1 %v168_v5  ;;  %v167_v7 = vld [vmem:[#allocation5 + $0x170] sm:$0xff]  ;;  %v166_v8 = vld [vmem:[#allocation5 + $0x168] sm:$0xff] }
  0x20   :  { %178 = vmatprep.subr.mxu0 %v1251_v0  ;;  %997 = vmatpush3.msra.mxu1 %v168_v5  ;;  %v131_v9 = vld [vmem:[#allocation5 + $0x50] sm:$0xff]  ;;  %v165_v10 = vld [vmem:[#allocation5 + $0x160] sm:$0xff]  ;;  %v130_v11 = vld [vmem:[#allocation5 + $0x48] sm:$0xff] }
  0x21   :  { %179 = vmatpush1.msra.mxu0 %v135_v2  ;;  %998 = vmatprep.subr.mxu1 %v167_v7  ;;  %v164_v12 = vld [vmem:[#allocation5 + $0x158] sm:$0xff]  ;;  %v129_v13 = vld [vmem:[#allocation5 + $0x40] sm:$0xff]  ;;  %v163_v14 = vld [vmem:[#allocation5 + $0x150] sm:$0xff] }
  0x22   :  { %180 = vmatprep.subr.mxu0 %v1251_v0  ;;  %999 = vmatpush3.msra.mxu1 %v167_v7  ;;  %v128_v15 = vld [vmem:[#allocation5 + $0x38] sm:$0xff]  ;;  %v162_v16 = vld [vmem:[#allocation5 + $0x148] sm:$0xff]  ;;  %v127_v17 = vld [vmem:[#allocation5 + $0x30] sm:$0xff] }
  0x23   :  { %181 = vmatpush1.msra.mxu0 %v134_v3  ;;  %1000 = vmatprep.subr.mxu1 %v166_v8  ;;  %v161_v18 = vld [vmem:[#allocation5 + $0x140] sm:$0xff]  ;;  %v126_v19 = vld [vmem:[#allocation5 + $0x28] sm:$0xff]  ;;  %v160_v20 = vld [vmem:[#allocation5 + $0x138] sm:$0xff] }
  0x24   :  { %182 = vmatprep.subr.mxu0 %v1251_v0  ;;  %1001 = vmatpush3.msra.mxu1 %v166_v8  ;;  %v125_v21 = vld [vmem:[#allocation5 + $0x20] sm:$0xff]  ;;  %v159_v22 = vld [vmem:[#allocation5 + $0x130] sm:$0xff]  ;;  %v124_v23 = vld [vmem:[#allocation5 + $0x18] sm:$0xff] }
  0x25   :  { %183 = vmatpush1.msra.mxu0 %v133_v4  ;;  %1002 = vmatprep.subr.mxu1 %v165_v10  ;;  %v158_v24 = vld [vmem:[#allocation5 + $0x128] sm:$0xff]  ;;  %v123_v25 = vld [vmem:[#allocation5 + $0x10] sm:$0xff]  ;;  %v157_v26 = vld [vmem:[#allocation5 + $0x120] sm:$0xff] }
  0x26   :  { %184 = vmatprep.subr.mxu0 %v1251_v0  ;;  %1003 = vmatpush3.msra.mxu1 %v165_v10  ;;  %v122_v27 = vld [vmem:[#allocation5 + $0x8] sm:$0xff]  ;;  %v156_v28 = vld [vmem:[#allocation5 + $0x118] sm:$0xff]  ;;  %v121_v29 = vld [vmem:[#allocation5] sm:$0xff] }
  0x27   :  { %185 = vmatpush1.msra.mxu0 %v132_v6  ;;  %1004 = vmatprep.subr.mxu1 %v164_v12  ;;  %v155_v30 = vld [vmem:[#allocation5 + $0x110] sm:$0xff]  ;;  %v152_v31 = vld [vmem:[#allocation5 + $0xf8] sm:$0xff]  ;;  %v154_v32 = vld [vmem:[#allocation5 + $0x108] sm:$0xff] }
  0x28   :  { %186 = vmatprep.subr.mxu0 %v1251_v0  ;;  %1005 = vmatpush3.msra.mxu1 %v164_v12  ;;  %v151_v33 = vld [vmem:[#allocation5 + $0xf0] sm:$0xff]  ;;  %v153_v34 = vld [vmem:[#allocation5 + $0x100] sm:$0xff]  ;;  %v150_v35 = vld [vmem:[#allocation5 + $0xe8] sm:$0xff] }
  0x29   :  { %187 = vmatpush1.msra.mxu0 %v131_v9  ;;  %1006 = vmatprep.subr.mxu1 %v163_v14  ;;  %v44_v36 = vld [vmem:[#allocation2 + $0x8] sm:$0xff]  ;;  %v149_v37 = vld [vmem:[#allocation5 + $0xe0] sm:$0xff]  ;;  %v51_v41 = vld [vmem:[#allocation2 + $0x40] sm:$0xff] }
  0x2a   :  { %188 = vmatprep.subr.mxu0 %v1251_v0  ;;  %1007 = vmatpush3.msra.mxu1 %v163_v14  ;;  %v45_v38 = vld [vmem:[#allocation2 + $0x10] sm:$0xff]  ;;  %v48_v39 = vld [vmem:[#allocation2 + $0x28] sm:$0xff]  ;;  %v147_v42 = vld [vmem:[#allocation5 + $0xd0] sm:$0xff] }
  0x2b   :  { %189 = vmatpush1.msra.mxu0 %v130_v11  ;;  %1008 = vmatprep.subr.mxu1 %v162_v16  ;;  %v148_v40 = vld [vmem:[#allocation5 + $0xd8] sm:$0xff]  ;;  %v54_v43 = vld [vmem:[#allocation2 + $0x58] sm:$0xff]  ;;  %v57_v45 = vld [vmem:[#allocation2 + $0x70] sm:$0xff] }
  0x2c   :  { %190 = vmatprep.subr.mxu0 %v1251_v0  ;;  %1009 = vmatpush3.msra.mxu1 %v162_v16  ;;  %v146_v44 = vld [vmem:[#allocation5 + $0xc8] sm:$0xff]  ;;  %v145_v46 = vld [vmem:[#allocation5 + $0xc0] sm:$0xff]  ;;  %v60_v47 = vld [vmem:[#allocation2 + $0x88] sm:$0xff] }
  0x2d   :  { %191 = vmatpush1.msra.mxu0 %v129_v13  ;;  %1010 = vmatprep.subr.mxu1 %v161_v18  ;;  %v144_v48 = vld [vmem:[#allocation5 + $0xb8] sm:$0xff]  ;;  %v63_v49 = vld [vmem:[#allocation2 + $0xa0] sm:$0xff]  ;;  %v66_v51 = vld [vmem:[#allocation2 + $0xb8] sm:$0xff] }
  0x2e   :  { %192 = vmatprep.subr.mxu0 %v1251_v0  ;;  %1011 = vmatpush3.msra.mxu1 %v161_v18  ;;  %v143_v50 = vld [vmem:[#allocation5 + $0xb0] sm:$0xff]  ;;  %v142_v52 = vld [vmem:[#allocation5 + $0xa8] sm:$0xff]  ;;  %v69_v53 = vld [vmem:[#allocation2 + $0xd0] sm:$0xff] }
  0x2f   :  { %193 = vmatpush1.msra.mxu0 %v128_v15  ;;  %1012 = vmatprep.subr.mxu1 %v160_v20  ;;  %v141_v54 = vld [vmem:[#allocation5 + $0xa0] sm:$0xff]  ;;  %v72_v55 = vld [vmem:[#allocation2 + $0xe8] sm:$0xff]  ;;  %v75_v57 = vld [vmem:[#allocation2 + $0x100] sm:$0xff] }
  0x30   :  { %194 = vmatprep.subr.mxu0 %v1251_v0  ;;  %1013 = vmatpush3.msra.mxu1 %v160_v20  ;;  %v140_v56 = vld [vmem:[#allocation5 + $0x98] sm:$0xff]  ;;  %v139_v58 = vld [vmem:[#allocation5 + $0x90] sm:$0xff]  ;;  %v78_v59 = vld [vmem:[#allocation2 + $0x118] sm:$0xff] }
  0x31   :  { %195 = vmatpush1.msra.mxu0 %v127_v17  ;;  %1014 = vmatprep.subr.mxu1 %v159_v22  ;;  %v138_v60 = vld [vmem:[#allocation5 + $0x88] sm:$0xff]  ;;  %v81_v61 = vld [vmem:[#allocation2 + $0x130] sm:$0xff]  ;;  %v43_v63 = vld [vmem:[#allocation2] sm:$0xff] }
  0x32   :  { %196 = vmatprep.subr.mxu0 %v1251_v0  ;;  %1015 = vmatpush3.msra.mxu1 %v159_v22  ;;  %v137_v62 = vld [vmem:[#allocation5 + $0x80] sm:$0xff]  ;;  %v84_v1 = vld [vmem:[#allocation2 + $0x148] sm:$0xff]  ;;  %v47_v2 = vld [vmem:[#allocation2 + $0x20] sm:$0xff] }
  0x33   :  { %197 = vmatpush1.msra.mxu0 %v126_v19  ;;  %1016 = vmatprep.subr.mxu1 %v158_v24  ;;  %v87_v3 = vld [vmem:[#allocation2 + $0x160] sm:$0xff]  ;;  %v46_v4 = vld [vmem:[#allocation2 + $0x18] sm:$0xff]  ;;  %v93_v7 = vld [vmem:[#allocation2 + $0x190] sm:$0xff] }
  0x34   :  { %198 = vmatprep.subr.mxu0 %v1251_v0  ;;  %1017 = vmatpush3.msra.mxu1 %v158_v24  ;;  %v90_v5 = vld [vmem:[#allocation2 + $0x178] sm:$0xff]  ;;  %v49_v8 = vld [vmem:[#allocation2 + $0x30] sm:$0xff]  ;;  %v96_v9 = vld [vmem:[#allocation2 + $0x1a8] sm:$0xff] }
  0x35   :  { %199 = vmatpush1.msra.mxu0 %v125_v21  ;;  %1018 = vmatprep.subr.mxu1 %v157_v26  ;;  %v50_v6 = vld [vmem:[#allocation2 + $0x38] sm:$0xff]  ;;  %v53_v10 = vld [vmem:[#allocation2 + $0x50] sm:$0xff]  ;;  %v99_v11 = vld [vmem:[#allocation2 + $0x1c0] sm:$0xff] }
  0x36   :  { %200 = vmatprep.subr.mxu0 %v1251_v0  ;;  %1019 = vmatpush3.msra.mxu1 %v157_v26  ;;  %v102_v12 = vld [vmem:[#allocation2 + $0x1d8] sm:$0xff]  ;;  %v56_v13 = vld [vmem:[#allocation2 + $0x68] sm:$0xff]  ;;  %v105_v14 = vld [vmem:[#allocation2 + $0x1f0] sm:$0xff] }
  0x37   :  { %201 = vmatpush1.msra.mxu0 %v124_v23  ;;  %1020 = vmatprep.subr.mxu1 %v156_v28  ;;  %v55_v15 = vld [vmem:[#allocation2 + $0x60] sm:$0xff]  ;;  %v108_v16 = vld [vmem:[#allocation2 + $0x208] sm:$0xff]  ;;  %v58_v19 = vld [vmem:[#allocation2 + $0x78] sm:$0xff] }
  0x38   :  { %202 = vmatprep.subr.mxu0 %v1251_v0  ;;  %1021 = vmatpush3.msra.mxu1 %v156_v28  ;;  %v59_v17 = vld [vmem:[#allocation2 + $0x80] sm:$0xff]  ;;  %v114_v20 = vld [vmem:[#allocation2 + $0x238] sm:$0xff]  ;;  %v117_v22 = vld [vmem:[#allocation2 + $0x250] sm:$0xff] }
  0x39   :  { %203 = vmatpush1.msra.mxu0 %v123_v25  ;;  %1022 = vmatprep.subr.mxu1 %v155_v30  ;;  %v111_v18 = vld [vmem:[#allocation2 + $0x220] sm:$0xff]  ;;  %v62_v21 = vld [vmem:[#allocation2 + $0x98] sm:$0xff]  ;;  %v61_v23 = vld [vmem:[#allocation2 + $0x90] sm:$0xff] }
  0x3a   :  { %204 = vmatprep.subr.mxu0 %v1251_v0  ;;  %1023 = vmatpush3.msra.mxu1 %v155_v30  ;;  %v120_v24 = vld [vmem:[#allocation2 + $0x268] sm:$0xff]  ;;  %v65_v25 = vld [vmem:[#allocation2 + $0xb0] sm:$0xff]  ;;  %v67_v28 = vld [vmem:[#allocation2 + $0xc0] sm:$0xff] }
  0x3b   :  { %205 = vmatpush1.msra.mxu0 %v122_v27  ;;  %1024 = vmatprep.subr.mxu1 %v154_v32  ;;  %v64_v26 = vld [vmem:[#allocation2 + $0xa8] sm:$0xff]  ;;  %v70_v30 = vld [vmem:[#allocation2 + $0xd8] sm:$0xff] }
  0x3c   :  { %206 = vmatprep.subr.mxu0 %v1251_v0  ;;  %1025 = vmatpush3.msra.mxu1 %v154_v32  ;;  %v68_v27 = vld [vmem:[#allocation2 + $0xc8] sm:$0xff]  ;;  %v73_v32 = vld [vmem:[#allocation2 + $0xf0] sm:$0xff] }
  0x3d   :  { %207 = vmatpush1.msra.mxu0 %v121_v29  ;;  %1026 = vmatprep.subr.mxu1 %v153_v34  ;;  %v71_v29 = vld [vmem:[#allocation2 + $0xe0] sm:$0xff] }
  0x3e   :  { %208 = vmatprep.subr.mxu0 %v1251_v0  ;;  %240 = vmatprep.mubr.f32.mxu0 %v44_v36  ;;  %v79_v36 = vld [vmem:[#allocation2 + $0x120] sm:$0xff] }
  0x3f   :  { %209 = vmatpush2.msra.mxu0 %v152_v31  ;;  %1027 = vmatpush3.msra.mxu1 %v153_v34  ;;  %v74_v31 = vld [vmem:[#allocation2 + $0xf8] sm:$0xff]  ;;  %v76_v34 = vld [vmem:[#allocation2 + $0x108] sm:$0xff] }
  0x40   :  { %210 = vmatprep.subr.mxu0 %v1251_v0  ;;  %1028 = vmatprep.mubr.f32.mxu1 %v45_v38  ;;  %v82_v38 = vld [vmem:[#allocation2 + $0x138] sm:$0xff] }
  0x41   :  { %211 = vmatpush2.msra.mxu0 %v151_v33  ;;  %1029 = vmatmul.mubr.f32.vlgmr.msra.gmra.mxu1 %v48_v39  ;;  %v77_v33 = vld [vmem:[#allocation2 + $0x110] sm:$0xff]  ;;  %v86_v39 = vld [vmem:[#allocation2 + $0x158] sm:$0xff] }
  0x42   :  { %212 = vmatprep.subr.mxu0 %v1251_v0  ;;  %1031 = vmatprep.mubr.f32.mxu1 %v51_v41  ;;  %v89_v41 = vld [vmem:[#allocation2 + $0x170] sm:$0xff] }
  0x43   :  { %213 = vmatpush2.msra.mxu0 %v150_v35  ;;  %v80_v35 = vld [vmem:[#allocation2 + $0x128] sm:$0xff] }
  0x44   :  { %214 = vmatprep.subr.mxu0 %v1251_v0 }
  0x45   :  { %215 = vmatpush2.msra.mxu0 %v149_v37  ;;  %1032 = vmatmul.mubr.f32.gmra.mxu1 %v54_v43  ;;  %v83_v37 = vld [vmem:[#allocation2 + $0x140] sm:$0xff]  ;;  %v92_v43 = vld [vmem:[#allocation2 + $0x188] sm:$0xff] }
  0x46   :  { %216 = vmatprep.subr.mxu0 %v1251_v0  ;;  %1034 = vmatprep.mubr.f32.mxu1 %v57_v45  ;;  %v95_v45 = vld [vmem:[#allocation2 + $0x1a0] sm:$0xff] }
  0x47   :  { %217 = vmatpush2.msra.mxu0 %v148_v40  ;;  %v85_v40 = vld [vmem:[#allocation2 + $0x150] sm:$0xff] }
  0x48   :  { %218 = vmatprep.subr.mxu0 %v1251_v0 }
  0x49   :  { %219 = vmatpush2.msra.mxu0 %v147_v42  ;;  %1035 = vmatmul.mubr.f32.gmra.mxu1 %v60_v47  ;;  %v88_v42 = vld [vmem:[#allocation2 + $0x168] sm:$0xff]  ;;  %v98_v47 = vld [vmem:[#allocation2 + $0x1b8] sm:$0xff] }
  0x4a   :  { %220 = vmatprep.subr.mxu0 %v1251_v0  ;;  %1037 = vmatprep.mubr.f32.mxu1 %v63_v49  ;;  %v101_v49 = vld [vmem:[#allocation2 + $0x1d0] sm:$0xff] }
  0x4b   :  { %221 = vmatpush2.msra.mxu0 %v146_v44  ;;  %v91_v44 = vld [vmem:[#allocation2 + $0x180] sm:$0xff] }
  0x4c   :  { %222 = vmatprep.subr.mxu0 %v1251_v0 }
  0x4d   :  { %223 = vmatpush2.msra.mxu0 %v145_v46  ;;  %1038 = vmatmul.mubr.f32.gmra.mxu1 %v66_v51  ;;  %v94_v46 = vld [vmem:[#allocation2 + $0x198] sm:$0xff]  ;;  %v104_v51 = vld [vmem:[#allocation2 + $0x1e8] sm:$0xff] }
  0x4e   :  { %224 = vmatprep.subr.mxu0 %v1251_v0  ;;  %1040 = vmatprep.mubr.f32.mxu1 %v69_v53  ;;  %v107_v53 = vld [vmem:[#allocation2 + $0x200] sm:$0xff] }
  0x4f   :  { %225 = vmatpush2.msra.mxu0 %v144_v48  ;;  %v97_v48 = vld [vmem:[#allocation2 + $0x1b0] sm:$0xff] }
  0x50   :  { %226 = vmatprep.subr.mxu0 %v1251_v0 }
  0x51   :  { %227 = vmatpush2.msra.mxu0 %v143_v50  ;;  %1041 = vmatmul.mubr.f32.gmra.mxu1 %v72_v55  ;;  %v100_v50 = vld [vmem:[#allocation2 + $0x1c8] sm:$0xff]  ;;  %v110_v55 = vld [vmem:[#allocation2 + $0x218] sm:$0xff] }
  0x52   :  { %228 = vmatprep.subr.mxu0 %v1251_v0  ;;  %1043 = vmatprep.mubr.f32.mxu1 %v75_v57  ;;  %v113_v57 = vld [vmem:[#allocation2 + $0x230] sm:$0xff] }
  0x53   :  { %229 = vmatpush2.msra.mxu0 %v142_v52  ;;  %v103_v52 = vld [vmem:[#allocation2 + $0x1e0] sm:$0xff] }
  0x54   :  { %230 = vmatprep.subr.mxu0 %v1251_v0 }
  0x55   :  { %231 = vmatpush2.msra.mxu0 %v141_v54  ;;  %1044 = vmatmul.mubr.f32.gmra.mxu1 %v78_v59  ;;  %v106_v54 = vld [vmem:[#allocation2 + $0x1f8] sm:$0xff]  ;;  %v116_v59 = vld [vmem:[#allocation2 + $0x248] sm:$0xff] }
  0x56   :  { %232 = vmatprep.subr.mxu0 %v1251_v0  ;;  %1046 = vmatprep.mubr.f32.mxu1 %v81_v61  ;;  %v119_v61 = vld [vmem:[#allocation2 + $0x260] sm:$0xff] }
  0x57   :  { %233 = vmatpush2.msra.mxu0 %v140_v56  ;;  %v109_v56 = vld [vmem:[#allocation2 + $0x210] sm:$0xff] }
  0x58   :  { %234 = vmatprep.subr.mxu0 %v1251_v0 }
  0x59   :  { %235 = vmatpush2.msra.mxu0 %v139_v58  ;;  %1047 = vmatmul.mubr.f32.gmra.mxu1 %v84_v1  ;;  %v112_v58 = vld [vmem:[#allocation2 + $0x228] sm:$0xff] }
  0x5a   :  { %236 = vmatprep.subr.mxu0 %v1251_v0  ;;  %1049 = vmatprep.mubr.f32.mxu1 %v87_v3  ;;  %v1317_v3 = vld [vmem:[%s1721_s2] ss:$0 sm:$0xff]  ;;  %s1252_s2 = smov [#allocation7]  }
  0x5b   :  { %237 = vmatpush2.msra.mxu0 %v138_v60  ;;  %v115_v60 = vld [vmem:[#allocation2 + $0x240] sm:$0xff]  ;;  %s940_s26 = sshll.u32 %s1252_s2, 4  ;;  %s941_s26 = int_to_ptr.vmem [resolvable:$true] %s940_s26 }
  0x5c   :  { %238 = vmatprep.subr.mxu0 %v1251_v0  ;;  %v52_v0 = vld [vmem:[#allocation2 + $0x48] sm:$0xff]  ;;  %s1219_s27 = scalar_lea.vmem %s941_s26, 3328  ;;  %p1224_p11 = scmp.lt.s32.totalorder %s941_s26, %s941_s26 }
  0x5d   :  { %239 = vmatpush2.msra.mxu0 %v137_v62  ;;  %1050 = vmatmul.mubr.f32.gmra.mxu1 %v90_v5  ;;  %v118_v62 = vld [vmem:[#allocation2 + $0x258] sm:$0xff]  ;;  %p1220_p10 = scmp.ne.s32.totalorder %s941_s26, %s1219_s27  ;;  %p1225_p12 = scmp.lt.s32.totalorder %s1219_s27, %s1219_s27 }
  0x5e   :  { %241 = vmatmul.mubr.f32.vlgmr.msra.gmra.mxu0 %v43_v63  ;;  %1052 = vmatprep.mubr.f32.mxu1 %v93_v7  ;;  %v566_v63 = vlaneseq }
  0x5f   :  { %245 = vmatprep.mubr.f32.mxu0 %v47_v2  ;;  %p1226_p13 = por %p1225_p12, %p1224_p11 }
  0x60   :  { %v567_v1 = vand.u32 127, %v566_v63 }
  0x61   :  { %1053 = vmatmul.mubr.f32.gmra.mxu1 %v96_v9  ;;  %p1227_p0 = pnand %p1226_p13, %p1220_p10 }
  0x62   :  { %246 = vmatmul.mubr.f32.gmra.mxu0 %v46_v4  ;;  %1055 = vmatprep.mubr.f32.mxu1 %v99_v11  ;;  %vm568_vm0 = vcmp.ge.s32.totalorder %v567_v1, 1  ;;  %vm569_vm1 = vcmp.lt.s32.totalorder %v567_v1, 11 }
  0x63   :  { %250 = vmatprep.mubr.f32.mxu0 %v50_v6  ;;  %vm1320_vm2 = vmand %vm568_vm0, %vm569_vm1 }
  0x65   :  { %1056 = vmatmul.mubr.f32.gmra.mxu1 %v102_v12 }
  0x66   :  { %251 = vmatmul.mubr.f32.gmra.mxu0 %v49_v8  ;;  %1058 = vmatprep.mubr.f32.mxu1 %v105_v14 }
  0x67   :  { %255 = vmatprep.mubr.f32.mxu0 %v53_v10 }
  0x69   :  { %1059 = vmatmul.mubr.f32.gmra.mxu1 %v108_v16 }
  0x6a   :  { %256 = vmatmul.mubr.f32.gmra.mxu0 %v52_v0  ;;  %1061 = vmatprep.mubr.f32.mxu1 %v111_v18 }
  0x6b   :  { %260 = vmatprep.mubr.f32.mxu0 %v56_v13 }
  0x6d   :  { %1062 = vmatmul.mubr.f32.gmra.mxu1 %v114_v20 }
  0x6e   :  { %261 = vmatmul.mubr.f32.gmra.mxu0 %v55_v15  ;;  %1064 = vmatprep.mubr.f32.mxu1 %v117_v22 }
  0x6f   :  { %265 = vmatprep.mubr.f32.mxu0 %v59_v17 }
  0x71   :  { %1065 = vmatmul.mubr.f32.gmra.mxu1 %v120_v24 }
  0x72   :  { %266 = vmatmul.mubr.f32.gmra.mxu0 %v58_v19 }
  0x73   :  { %270 = vmatprep.mubr.f32.mxu0 %v62_v21 }
  0x76   :  { %271 = vmatmul.mubr.f32.gmra.mxu0 %v61_v23 }
  0x77   :  { %275 = vmatprep.mubr.f32.mxu0 %v65_v25 }
  0x7a   :  { %276 = vmatmul.mubr.f32.gmra.mxu0 %v64_v26 }
  0x7b   :  { %280 = vmatprep.mubr.f32.mxu0 %v68_v27 }
  0x7e   :  { %281 = vmatmul.mubr.f32.gmra.mxu0 %v67_v28 }
  0x7f   :  { %285 = vmatprep.mubr.f32.mxu0 %v71_v29 }
  0x82   :  { %286 = vmatmul.mubr.f32.gmra.mxu0 %v70_v30 }
  0x83   :  { %290 = vmatprep.mubr.f32.mxu0 %v74_v31 }
  0x86   :  { %291 = vmatmul.mubr.f32.gmra.mxu0 %v73_v32 }
  0x87   :  { %295 = vmatprep.mubr.f32.mxu0 %v77_v33 }
  0x8a   :  { %296 = vmatmul.mubr.f32.gmra.mxu0 %v76_v34 }
  0x8b   :  { %300 = vmatprep.mubr.f32.mxu0 %v80_v35 }
  0x8e   :  { %301 = vmatmul.mubr.f32.gmra.mxu0 %v79_v36 }
  0x8f   :  { %305 = vmatprep.mubr.f32.mxu0 %v83_v37 }
  0x92   :  { %306 = vmatmul.mubr.f32.gmra.mxu0 %v82_v38 }
  0x93   :  { %310 = vmatprep.mubr.f32.mxu0 %v86_v39 }
  0x96   :  { %311 = vmatmul.mubr.f32.gmra.mxu0 %v85_v40 }
  0x97   :  { %315 = vmatprep.mubr.f32.mxu0 %v89_v41 }
  0x9a   :  { %316 = vmatmul.mubr.f32.gmra.mxu0 %v88_v42 }
  0x9b   :  { %320 = vmatprep.mubr.f32.mxu0 %v92_v43 }
  0x9e   :  { %321 = vmatmul.mubr.f32.gmra.mxu0 %v91_v44 }
  0x9f   :  { %325 = vmatprep.mubr.f32.mxu0 %v95_v45 }
  0xa2   :  { %326 = vmatmul.mubr.f32.gmra.mxu0 %v94_v46 }
  0xa3   :  { %330 = vmatprep.mubr.f32.mxu0 %v98_v47 }
  0xa6   :  { %331 = vmatmul.mubr.f32.gmra.mxu0 %v97_v48 }
  0xa7   :  { %335 = vmatprep.mubr.f32.mxu0 %v101_v49 }
  0xaa   :  { %336 = vmatmul.mubr.f32.gmra.mxu0 %v100_v50 }
  0xab   :  { %340 = vmatprep.mubr.f32.mxu0 %v104_v51 }
  0xae   :  { %341 = vmatmul.mubr.f32.gmra.mxu0 %v103_v52 }
  0xaf   :  { %345 = vmatprep.mubr.f32.mxu0 %v107_v53 }
  0xb2   :  { %346 = vmatmul.mubr.f32.gmra.mxu0 %v106_v54 }
  0xb3   :  { %350 = vmatprep.mubr.f32.mxu0 %v110_v55 }
  0xb6   :  { %351 = vmatmul.mubr.f32.gmra.mxu0 %v109_v56 }
  0xb7   :  { %355 = vmatprep.mubr.f32.mxu0 %v113_v57 }
  0xba   :  { %356 = vmatmul.mubr.f32.gmra.mxu0 %v112_v58 }
  0xbb   :  { %360 = vmatprep.mubr.f32.mxu0 %v116_v59 }
  0xbe   :  { %361 = vmatmul.mubr.f32.gmra.mxu0 %v115_v60 }
  0xbf   :  { %365 = vmatprep.mubr.f32.mxu0 %v119_v61 }
  0xc2   :  { %366 = vmatmul.mubr.f32.gmra.mxu0 %v118_v62 }
 0x101   :  { %v1030_v2 = vpop.f32.mrf.mxu1 }
 0x103   :  { %v437_v5 = vpop.f32.mrf.mxu1 }
 0x105   :  { %v1033_v11 = vpop.f32.mrf.mxu1 }
 0x107   :  { %v447_v16 = vpop.f32.mrf.mxu1 }
 0x109   :  { %v1036_v22 = vpop.f32.mrf.mxu1 }
 0x10b   :  { %v457_v28 = vpop.f32.mrf.mxu1 }
 0x10d   :  { %v1039_v34 = vpop.f32.mrf.mxu1 }
 0x10f   :  { %v467_v40 = vpop.f32.mrf.mxu1 }
 0x111   :  { %v1042_v46 = vpop.f32.mrf.mxu1 }
 0x113   :  { %v477_v52 = vpop.f32.mrf.mxu1 }
 0x115   :  { %v1045_v58 = vpop.f32.mrf.mxu1 }
 0x117   :  { %v487_v1 = vpop.f32.mrf.mxu1 }
 0x11e   :  { %v242_v4 = vpop.f32.mrf.mxu0 }
 0x11f   :  { %v243_v6 = vadd.f32 %v1317_v3, %v242_v4 }
 0x120   :  { %v244_v7 = vpop.f32.mrf.mxu0 }
 0x121   :  { %v1324_v9 = vadd.f32 %v437_v5, %v243_v6 }
 0x122   :  { %v247_v10 = vpop.f32.mrf.mxu0 }
 0x123   :  { %v248_v0 = vadd.f32 %v1317_v3, %v247_v10  ;;  %v571_v12 = vsel %vm1320_vm2, %v1324_v9, -inf  ;;  %v1048_v10 = vpop.f32.mrf.mxu1 }
 0x124   :  { %v249_v13 = vpop.f32.mrf.mxu0  ;;  %597 = vmax.xlane.f32.xlu0 %v571_v12 }
 0x125   :  { %v1330_v14 = vadd.f32 %v1030_v2, %v248_v0 }
 0x126   :  { %v252_v15 = vpop.f32.mrf.mxu0 }
 0x127   :  { %v253_v17 = vadd.f32 %v1317_v3, %v252_v15  ;;  %v572_v18 = vsel %vm1320_vm2, %v1330_v14, -inf }
 0x128   :  { %v254_v19 = vpop.f32.mrf.mxu0  ;;  %599 = vmax.xlane.f32.xlu0 %v572_v18 }
 0x129   :  { %v1336_v20 = vadd.f32 %v447_v16, %v253_v17  ;;  %v497_v16 = vpop.f32.mrf.mxu1 }
 0x12a   :  { %v257_v21 = vpop.f32.mrf.mxu0 }
 0x12b   :  { %v258_v23 = vadd.f32 %v1317_v3, %v257_v21  ;;  %v573_v24 = vsel %vm1320_vm2, %v1336_v20, -inf }
 0x12c   :  { %v259_v25 = vpop.f32.mrf.mxu0  ;;  %601 = vmax.xlane.f32.xlu1 %v573_v24 }
 0x12d   :  { %v1342_v26 = vadd.f32 %v1033_v11, %v258_v23  ;;  %v1051_v23 = vpop.f32.mrf.mxu1 }
 0x12e   :  { %v262_v27 = vpop.f32.mrf.mxu0 }
 0x12f   :  { %v263_v29 = vadd.f32 %v1317_v3, %v262_v27  ;;  %v574_v30 = vsel %vm1320_vm2, %v1342_v26, -inf }
 0x130   :  { %v264_v31 = vpop.f32.mrf.mxu0  ;;  %603 = vmax.xlane.f32.xlu1 %v574_v30  ;;  %v507_v30 = vpop.f32.mrf.mxu1 }
 0x131   :  { %v1348_v32 = vadd.f32 %v457_v28, %v263_v29 }
 0x132   :  { %v267_v33 = vpop.f32.mrf.mxu0 }
 0x133   :  { %v268_v35 = vadd.f32 %v1317_v3, %v267_v33  ;;  %v575_v36 = vsel %vm1320_vm2, %v1348_v32, -inf }
 0x134   :  { %v269_v37 = vpop.f32.mrf.mxu0  ;;  %605 = vmax.xlane.f32.xlu0 %v575_v36 }
 0x135   :  { %v1354_v38 = vadd.f32 %v1036_v22, %v268_v35  ;;  %v1054_v37 = vpop.f32.mrf.mxu1 }
 0x136   :  { %v272_v39 = vpop.f32.mrf.mxu0 }
 0x137   :  { %v273_v41 = vadd.f32 %v1317_v3, %v272_v39  ;;  %v576_v42 = vsel %vm1320_vm2, %v1354_v38, -inf }
 0x138   :  { %v274_v43 = vpop.f32.mrf.mxu0  ;;  %607 = vmax.xlane.f32.xlu1 %v576_v42 }
 0x139   :  { %v1360_v44 = vadd.f32 %v467_v40, %v273_v41 }
 0x13a   :  { %v277_v45 = vpop.f32.mrf.mxu0 }
 0x13b   :  { %v278_v47 = vadd.f32 %v1317_v3, %v277_v45  ;;  %v577_v48 = vsel %vm1320_vm2, %v1360_v44, -inf  ;;  %v517_v45 = vpop.f32.mrf.mxu1 }
 0x13c   :  { %v279_v49 = vpop.f32.mrf.mxu0  ;;  %609 = vmax.xlane.f32.xlu0 %v577_v48 }
 0x13d   :  { %v1366_v50 = vadd.f32 %v1039_v34, %v278_v47 }
 0x13e   :  { %v282_v51 = vpop.f32.mrf.mxu0 }
 0x13f   :  { %v283_v53 = vadd.f32 %v1317_v3, %v282_v51  ;;  %v578_v54 = vsel %vm1320_vm2, %v1366_v50, -inf }
 0x140   :  { %v284_v55 = vpop.f32.mrf.mxu0  ;;  %611 = vmax.xlane.f32.xlu1 %v578_v54 }
 0x141   :  { %v1372_v56 = vadd.f32 %v477_v52, %v283_v53  ;;  %v1057_v52 = vpop.f32.mrf.mxu1 }
 0x142   :  { %v287_v57 = vpop.f32.mrf.mxu0 }
 0x143   :  { %v288_v59 = vadd.f32 %v1317_v3, %v287_v57  ;;  %v579_v60 = vsel %vm1320_vm2, %v1372_v56, -inf }
 0x144   :  { %v289_v61 = vpop.f32.mrf.mxu0  ;;  %613 = vmax.xlane.f32.xlu0 %v579_v60 }
 0x145   :  { %v1378_v62 = vadd.f32 %v1042_v46, %v288_v59  ;;  %v527_v59 = vpop.f32.mrf.mxu1 }
 0x146   :  { %v292_v63 = vpop.f32.mrf.mxu0 }
 0x147   :  { %v293_v2 = vadd.f32 %v1317_v3, %v292_v63  ;;  %v580_v4 = vsel %vm1320_vm2, %v1378_v62, -inf }
 0x148   :  { %v294_v5 = vpop.f32.mrf.mxu0  ;;  %615 = vmax.xlane.f32.xlu1 %v580_v4  ;;  %v1060_v4 = vpop.f32.mrf.mxu1 }
 0x149   :  { %v1384_v6 = vadd.f32 %v487_v1, %v293_v2 }
 0x14a   :  { %v297_v7 = vpop.f32.mrf.mxu0 }
 0x14b   :  { %v298_v11 = vadd.f32 %v1317_v3, %v297_v7  ;;  %v581_v0 = vsel %vm1320_vm2, %v1384_v6, -inf }
 0x14c   :  { %v299_v12 = vpop.f32.mrf.mxu0  ;;  %617 = vmax.xlane.f32.xlu0 %v581_v0 }
 0x14d   :  { %v1390_v13 = vadd.f32 %v1045_v58, %v298_v11  ;;  %v537_v12 = vpop.f32.mrf.mxu1 }
 0x14e   :  { %v302_v15 = vpop.f32.mrf.mxu0 }
 0x14f   :  { %v303_v17 = vadd.f32 %v1317_v3, %v302_v15  ;;  %v582_v18 = vsel %vm1320_vm2, %v1390_v13, -inf }
 0x150   :  { %v304_v19 = vpop.f32.mrf.mxu0  ;;  %619 = vmax.xlane.f32.xlu1 %v582_v18 }
 0x151   :  { %v1396_v21 = vadd.f32 %v497_v16, %v303_v17 }
 0x152   :  { %v307_v22 = vpop.f32.mrf.mxu0 }
 0x153   :  { %v308_v24 = vadd.f32 %v1317_v3, %v307_v22  ;;  %v583_v25 = vsel %vm1320_vm2, %v1396_v21, -inf  ;;  %v1063_v22 = vpop.f32.mrf.mxu1 }
 0x154   :  { %v309_v27 = vpop.f32.mrf.mxu0  ;;  %621 = vmax.xlane.f32.xlu0 %v583_v25 }
 0x155   :  { %v1402_v28 = vadd.f32 %v1048_v10, %v308_v24 }
 0x156   :  { %v312_v29 = vpop.f32.mrf.mxu0 }
 0x157   :  { %v313_v31 = vadd.f32 %v1317_v3, %v312_v29  ;;  %v584_v33 = vsel %vm1320_vm2, %v1402_v28, -inf }
 0x158   :  { %v314_v34 = vpop.f32.mrf.mxu0  ;;  %623 = vmax.xlane.f32.xlu1 %v584_v33 }
 0x159   :  { %v1408_v35 = vadd.f32 %v507_v30, %v313_v31  ;;  %v547_v30 = vpop.f32.mrf.mxu1 }
 0x15a   :  { %v317_v36 = vpop.f32.mrf.mxu0 }
 0x15b   :  { %v318_v39 = vadd.f32 %v1317_v3, %v317_v36  ;;  %v585_v40 = vsel %vm1320_vm2, %v1408_v35, -inf }
 0x15c   :  { %v319_v41 = vpop.f32.mrf.mxu0  ;;  %625 = vmax.xlane.f32.xlu0 %v585_v40 }
 0x15d   :  { %v1414_v42 = vadd.f32 %v1051_v23, %v318_v39  ;;  %v1066_v39 = vpop.f32.mrf.mxu1 }
 0x15e   :  { %v322_v43 = vpop.f32.mrf.mxu0 }
 0x15f   :  { %v323_v46 = vadd.f32 %v1317_v3, %v322_v43  ;;  %v586_v47 = vsel %vm1320_vm2, %v1414_v42, -inf }
 0x160   :  { %v324_v48 = vpop.f32.mrf.mxu0  ;;  %627 = vmax.xlane.f32.xlu1 %v586_v47  ;;  %v557_v47 = vpop.f32.mrf.mxu1 }
 0x161   :  { %v1420_v49 = vadd.f32 %v517_v45, %v323_v46 }
 0x162   :  { %v327_v51 = vpop.f32.mrf.mxu0 }
 0x163   :  { %v328_v53 = vadd.f32 %v1317_v3, %v327_v51  ;;  %v587_v54 = vsel %vm1320_vm2, %v1420_v49, -inf }
 0x164   :  { %v329_v55 = vpop.f32.mrf.mxu0  ;;  %629 = vmax.xlane.f32.xlu0 %v587_v54 }
 0x165   :  { %v1426_v57 = vadd.f32 %v1054_v37, %v328_v53 }
 0x166   :  { %v332_v58 = vpop.f32.mrf.mxu0 }
 0x167   :  { %v333_v60 = vadd.f32 %v1317_v3, %v332_v58  ;;  %v588_v61 = vsel %vm1320_vm2, %v1426_v57, -inf }
 0x168   :  { %v334_v63 = vpop.f32.mrf.mxu0  ;;  %631 = vmax.xlane.f32.xlu1 %v588_v61 }
 0x169   :  { %v1432_v1 = vadd.f32 %v527_v59, %v333_v60 }
 0x16a   :  { %v337_v2 = vpop.f32.mrf.mxu0 }
 0x16b   :  { %v338_v5 = vadd.f32 %v1317_v3, %v337_v2  ;;  %v589_v7 = vsel %vm1320_vm2, %v1432_v1, -inf }
 0x16c   :  { %v339_v10 = vpop.f32.mrf.mxu0  ;;  %633 = vmax.xlane.f32.xlu0 %v589_v7 }
 0x16d   :  { %v1438_v11 = vadd.f32 %v1057_v52, %v338_v5 }
 0x16e   :  { %v342_v0 = vpop.f32.mrf.mxu0 }
 0x16f   :  { %v343_v15 = vadd.f32 %v1317_v3, %v342_v0  ;;  %v590_v16 = vsel %vm1320_vm2, %v1438_v11, -inf }
 0x170   :  { %v344_v17 = vpop.f32.mrf.mxu0  ;;  %635 = vmax.xlane.f32.xlu1 %v590_v16 }
 0x171   :  { %v1444_v18 = vadd.f32 %v537_v12, %v343_v15 }
 0x172   :  { %v347_v19 = vpop.f32.mrf.mxu0 }
 0x173   :  { %v348_v23 = vadd.f32 %v1317_v3, %v347_v19  ;;  %v591_v24 = vsel %vm1320_vm2, %v1444_v18, -inf }
 0x174   :  { %v349_v25 = vpop.f32.mrf.mxu0  ;;  %637 = vmax.xlane.f32.xlu0 %v591_v24 }
 0x175   :  { %v1450_v27 = vadd.f32 %v1060_v4, %v348_v23 }
 0x176   :  { %v352_v29 = vpop.f32.mrf.mxu0 }
 0x177   :  { %v353_v31 = vadd.f32 %v1317_v3, %v352_v29  ;;  %v592_v33 = vsel %vm1320_vm2, %v1450_v27, -inf }
 0x178   :  { %v354_v34 = vpop.f32.mrf.mxu0  ;;  %639 = vmax.xlane.f32.xlu1 %v592_v33 }
 0x179   :  { %v1456_v36 = vadd.f32 %v547_v30, %v353_v31 }
 0x17a   :  { %v357_v37 = vpop.f32.mrf.mxu0 }
 0x17b   :  { %v358_v40 = vadd.f32 %v1317_v3, %v357_v37  ;;  %v593_v41 = vsel %vm1320_vm2, %v1456_v36, -inf }
 0x17c   :  { %v359_v43 = vpop.f32.mrf.mxu0  ;;  %641 = vmax.xlane.f32.xlu0 %v593_v41 }
 0x17d   :  { %v1462_v45 = vadd.f32 %v1063_v22, %v358_v40 }
 0x17e   :  { %v362_v46 = vpop.f32.mrf.mxu0 }
 0x17f   :  { %v363_v48 = vadd.f32 %v1317_v3, %v362_v46  ;;  %v594_v51 = vsel %vm1320_vm2, %v1462_v45, -inf }
 0x180   :  { %v364_v52 = vpop.f32.mrf.mxu0  ;;  %643 = vmax.xlane.f32.xlu1 %v594_v51 }
 0x181   :  { %v1468_v53 = vadd.f32 %v557_v47, %v363_v48 }
 0x182   :  { %v367_v54 = vpop.f32.mrf.mxu0 }
 0x183   :  { %v368_v55 = vadd.f32 %v1317_v3, %v367_v54  ;;  %v595_v58 = vsel %vm1320_vm2, %v1468_v53, -inf }
 0x184   :  { %v369_v59 = vpop.f32.mrf.mxu0  ;;  %645 = vmax.xlane.f32.xlu0 %v595_v58 }
 0x185   :  { %v1474_v60 = vadd.f32 %v1066_v39, %v368_v55 }
 0x187   :  { %v596_v61 = vsel %vm1320_vm2, %v1474_v60, -inf }
 0x188   :  { %647 = vmax.xlane.f32.xlu1 %v596_v61 }
 0x1ad   :  { %v598_v63 = vpop.xlane.xlu0 %597 }
 0x1ae   :  { %v1480_v2 = vsub.f32 %v1324_v9, %v598_v63 }
 0x1b0   :  { %v675_v4 = vmul.f32 1.442695, %v1480_v2 }
 0x1b1   :  { %v600_v3 = vpop.xlane.xlu0 %599 }
 0x1b2   :  { %1075 = vpow2.f32 %v675_v4  ;;  %v1484_v5 = vsub.f32 %v1330_v14, %v600_v3 }
 0x1b4   :  { %v677_v7 = vmul.f32 1.442695, %v1484_v5 }
 0x1b5   :  { %v602_v10 = vpop.xlane.xlu1 %601 }
 0x1b6   :  { %1077 = vpow2.f32 %v677_v7  ;;  %v1488_v0 = vsub.f32 %v1336_v20, %v602_v10 }
 0x1b8   :  { %v679_v12 = vmul.f32 1.442695, %v1488_v0 }
 0x1b9   :  { %v604_v15 = vpop.xlane.xlu1 %603 }
 0x1ba   :  { %1079 = vpow2.f32 %v679_v12  ;;  %v1492_v9 = vsub.f32 %v1342_v26, %v604_v15 }
 0x1bc   :  { %v681_v16 = vmul.f32 1.442695, %v1492_v9 }
 0x1bd   :  { %v606_v17 = vpop.xlane.xlu0 %605 }
 0x1be   :  { %1081 = vpow2.f32 %v681_v16  ;;  %v1496_v14 = vsub.f32 %v1348_v32, %v606_v17 }
 0x1bf   :  { %v1076_v19 = vpop.eup %1075 }
 0x1c0   :  { %v683_v22 = vmul.f32 1.442695, %v1496_v14  ;;  %v727_v20 = vsel %vm1320_vm2, %v1076_v19, 0.0 }
 0x1c1   :  { %v608_v23 = vpop.xlane.xlu1 %607  ;;  %753 = vadd.xlane.f32.xlu0 %v727_v20 }
 0x1c2   :  { %1083 = vpow2.f32 %v683_v22  ;;  %v1502_v24 = vsub.f32 %v1354_v38, %v608_v23 }
 0x1c3   :  { %v1078_v26 = vpop.eup %1077 }
 0x1c4   :  { %v685_v25 = vmul.f32 1.442695, %v1502_v24  ;;  %v728_v29 = vsel %vm1320_vm2, %v1078_v26, 0.0 }
 0x1c5   :  { %755 = vadd.xlane.f32.xlu1 %v728_v29  ;;  %v610_v32 = vpop.xlane.xlu0 %609 }
 0x1c6   :  { %1085 = vpow2.f32 %v685_v25  ;;  %v1508_v30 = vsub.f32 %v1360_v44, %v610_v32 }
 0x1c7   :  { %v1080_v31 = vpop.eup %1079 }
 0x1c8   :  { %v687_v33 = vmul.f32 1.442695, %v1508_v30  ;;  %v729_v34 = vsel %vm1320_vm2, %v1080_v31, 0.0 }
 0x1c9   :  { %v612_v38 = vpop.xlane.xlu1 %611  ;;  %757 = vadd.xlane.f32.xlu0 %v729_v34 }
 0x1ca   :  { %1087 = vpow2.f32 %v687_v33  ;;  %v1514_v37 = vsub.f32 %v1366_v50, %v612_v38 }
 0x1cb   :  { %v1082_v39 = vpop.eup %1081 }
 0x1cc   :  { %v689_v40 = vmul.f32 1.442695, %v1514_v37  ;;  %v730_v41 = vsel %vm1320_vm2, %v1082_v39, 0.0 }
 0x1cd   :  { %759 = vadd.xlane.f32.xlu1 %v730_v41  ;;  %v614_v44 = vpop.xlane.xlu0 %613 }
 0x1ce   :  { %1089 = vpow2.f32 %v689_v40  ;;  %v1520_v43 = vsub.f32 %v1372_v56, %v614_v44 }
 0x1cf   :  { %v1084_v46 = vpop.eup %1083 }
 0x1d0   :  { %v691_v47 = vmul.f32 1.442695, %v1520_v43  ;;  %v731_v48 = vsel %vm1320_vm2, %v1084_v46, 0.0 }
 0x1d1   :  { %v616_v50 = vpop.xlane.xlu1 %615  ;;  %761 = vadd.xlane.f32.xlu0 %v731_v48 }
 0x1d2   :  { %1091 = vpow2.f32 %v691_v47  ;;  %v1526_v51 = vsub.f32 %v1378_v62, %v616_v50 }
 0x1d3   :  { %v1086_v52 = vpop.eup %1085 }
 0x1d4   :  { %v693_v54 = vmul.f32 1.442695, %v1526_v51  ;;  %v732_v55 = vsel %vm1320_vm2, %v1086_v52, 0.0 }
 0x1d5   :  { %763 = vadd.xlane.f32.xlu1 %v732_v55  ;;  %v618_v56 = vpop.xlane.xlu0 %617 }
 0x1d6   :  { %1093 = vpow2.f32 %v693_v54  ;;  %v1532_v58 = vsub.f32 %v1384_v6, %v618_v56 }
 0x1d7   :  { %v1088_v59 = vpop.eup %1087 }
 0x1d8   :  { %v695_v61 = vmul.f32 1.442695, %v1532_v58  ;;  %v733_v63 = vsel %vm1320_vm2, %v1088_v59, 0.0 }
 0x1d9   :  { %v620_v62 = vpop.xlane.xlu1 %619  ;;  %765 = vadd.xlane.f32.xlu0 %v733_v63 }
 0x1da   :  { %1095 = vpow2.f32 %v695_v61  ;;  %v1538_v4 = vsub.f32 %v1390_v13, %v620_v62 }
 0x1db   :  { %v1090_v3 = vpop.eup %1089 }
 0x1dc   :  { %v697_v7 = vmul.f32 1.442695, %v1538_v4  ;;  %v734_v10 = vsel %vm1320_vm2, %v1090_v3, 0.0 }
 0x1dd   :  { %767 = vadd.xlane.f32.xlu1 %v734_v10  ;;  %v622_v6 = vpop.xlane.xlu0 %621 }
 0x1de   :  { %1097 = vpow2.f32 %v697_v7  ;;  %v1544_v12 = vsub.f32 %v1396_v21, %v622_v6 }
 0x1df   :  { %v1092_v15 = vpop.eup %1091 }
 0x1e0   :  { %v699_v16 = vmul.f32 1.442695, %v1544_v12  ;;  %v735_v17 = vsel %vm1320_vm2, %v1092_v15, 0.0 }
 0x1e1   :  { %v624_v13 = vpop.xlane.xlu1 %623  ;;  %769 = vadd.xlane.f32.xlu0 %v735_v17 }
 0x1e2   :  { %1099 = vpow2.f32 %v699_v16  ;;  %v1550_v19 = vsub.f32 %v1402_v28, %v624_v13 }
 0x1e3   :  { %v1094_v22 = vpop.eup %1093 }
 0x1e4   :  { %v701_v20 = vmul.f32 1.442695, %v1550_v19  ;;  %v736_v23 = vsel %vm1320_vm2, %v1094_v22, 0.0 }
 0x1e5   :  { %771 = vadd.xlane.f32.xlu1 %v736_v23  ;;  %v626_v21 = vpop.xlane.xlu0 %625 }
 0x1e6   :  { %1101 = vpow2.f32 %v701_v20  ;;  %v1556_v26 = vsub.f32 %v1408_v35, %v626_v21 }
 0x1e7   :  { %v1096_v25 = vpop.eup %1095 }
 0x1e8   :  { %v703_v29 = vmul.f32 1.442695, %v1556_v26  ;;  %v737_v32 = vsel %vm1320_vm2, %v1096_v25, 0.0 }
 0x1e9   :  { %v628_v28 = vpop.xlane.xlu1 %627  ;;  %773 = vadd.xlane.f32.xlu0 %v737_v32 }
 0x1ea   :  { %1103 = vpow2.f32 %v703_v29  ;;  %v1562_v31 = vsub.f32 %v1414_v42, %v628_v28 }
 0x1eb   :  { %v1098_v33 = vpop.eup %1097 }
 0x1ec   :  { %v705_v34 = vmul.f32 1.442695, %v1562_v31  ;;  %v738_v38 = vsel %vm1320_vm2, %v1098_v33, 0.0 }
 0x1ed   :  { %775 = vadd.xlane.f32.xlu1 %v738_v38  ;;  %v630_v35 = vpop.xlane.xlu0 %629 }
 0x1ee   :  { %1105 = vpow2.f32 %v705_v34  ;;  %v1568_v39 = vsub.f32 %v1420_v49, %v630_v35 }
 0x1ef   :  { %v1100_v40 = vpop.eup %1099 }
 0x1f0   :  { %v707_v41 = vmul.f32 1.442695, %v1568_v39  ;;  %v739_v44 = vsel %vm1320_vm2, %v1100_v40, 0.0 }
 0x1f1   :  { %v632_v42 = vpop.xlane.xlu1 %631  ;;  %777 = vadd.xlane.f32.xlu0 %v739_v44 }
 0x1f2   :  { %1107 = vpow2.f32 %v707_v41  ;;  %v1574_v46 = vsub.f32 %v1426_v57, %v632_v42 }
 0x1f3   :  { %v1102_v47 = vpop.eup %1101 }
 0x1f4   :  { %v709_v48 = vmul.f32 1.442695, %v1574_v46  ;;  %v740_v50 = vsel %vm1320_vm2, %v1102_v47, 0.0 }
 0x1f5   :  { %779 = vadd.xlane.f32.xlu1 %v740_v50  ;;  %v634_v49 = vpop.xlane.xlu0 %633 }
 0x1f6   :  { %1109 = vpow2.f32 %v709_v48  ;;  %v1580_v52 = vsub.f32 %v1432_v1, %v634_v49 }
 0x1f7   :  { %v1104_v54 = vpop.eup %1103 }
 0x1f8   :  { %v711_v55 = vmul.f32 1.442695, %v1580_v52  ;;  %v741_v56 = vsel %vm1320_vm2, %v1104_v54, 0.0 }
 0x1f9   :  { %v636_v57 = vpop.xlane.xlu1 %635  ;;  %781 = vadd.xlane.f32.xlu0 %v741_v56 }
 0x1fa   :  { %1111 = vpow2.f32 %v711_v55  ;;  %v1586_v59 = vsub.f32 %v1438_v11, %v636_v57 }
 0x1fb   :  { %v1106_v61 = vpop.eup %1105 }
 0x1fc   :  { %v713_v63 = vmul.f32 1.442695, %v1586_v59  ;;  %v742_v62 = vsel %vm1320_vm2, %v1106_v61, 0.0 }
 0x1fd   :  { %783 = vadd.xlane.f32.xlu1 %v742_v62  ;;  %v638_v1 = vpop.xlane.xlu0 %637 }
 0x1fe   :  { %1113 = vpow2.f32 %v713_v63  ;;  %v1592_v3 = vsub.f32 %v1444_v18, %v638_v1 }
 0x1ff   :  { %v1108_v7 = vpop.eup %1107 }
 0x200   :  { %v715_v10 = vmul.f32 1.442695, %v1592_v3  ;;  %v743_v6 = vsel %vm1320_vm2, %v1108_v7, 0.0 }
 0x201   :  { %v640_v11 = vpop.xlane.xlu1 %639  ;;  %785 = vadd.xlane.f32.xlu0 %v743_v6 }
 0x202   :  { %1115 = vpow2.f32 %v715_v10  ;;  %v1598_v15 = vsub.f32 %v1450_v27, %v640_v11 }
 0x203   :  { %v1110_v16 = vpop.eup %1109 }
 0x204   :  { %v717_v17 = vmul.f32 1.442695, %v1598_v15  ;;  %v744_v13 = vsel %vm1320_vm2, %v1110_v16, 0.0 }
 0x205   :  { %787 = vadd.xlane.f32.xlu1 %v744_v13  ;;  %v642_v18 = vpop.xlane.xlu0 %641 }
 0x206   :  { %1117 = vpow2.f32 %v717_v17  ;;  %v1604_v22 = vsub.f32 %v1456_v36, %v642_v18 }
 0x207   :  { %v1112_v20 = vpop.eup %1111 }
 0x208   :  { %v719_v23 = vmul.f32 1.442695, %v1604_v22  ;;  %v745_v21 = vsel %vm1320_vm2, %v1112_v20, 0.0 }
 0x209   :  { %v644_v27 = vpop.xlane.xlu1 %643  ;;  %789 = vadd.xlane.f32.xlu0 %v745_v21 }
 0x20a   :  { %1119 = vpow2.f32 %v719_v23  ;;  %v1610_v25 = vsub.f32 %v1462_v45, %v644_v27 }
 0x20b   :  { %v1114_v29 = vpop.eup %1113 }
 0x20c   :  { %v721_v32 = vmul.f32 1.442695, %v1610_v25  ;;  %v746_v28 = vsel %vm1320_vm2, %v1114_v29, 0.0 }
 0x20d   :  { %791 = vadd.xlane.f32.xlu1 %v746_v28  ;;  %v646_v36 = vpop.xlane.xlu0 %645 }
 0x20e   :  { %1121 = vpow2.f32 %v721_v32  ;;  %v1616_v33 = vsub.f32 %v1468_v53, %v646_v36 }
 0x20f   :  { %v1116_v34 = vpop.eup %1115 }
 0x210   :  { %v723_v38 = vmul.f32 1.442695, %v1616_v33  ;;  %v747_v35 = vsel %vm1320_vm2, %v1116_v34, 0.0 }
 0x211   :  { %v648_v45 = vpop.xlane.xlu1 %647  ;;  %793 = vadd.xlane.f32.xlu0 %v747_v35 }
 0x212   :  { %1123 = vpow2.f32 %v723_v38  ;;  %v1622_v40 = vsub.f32 %v1474_v60, %v648_v45 }
 0x213   :  { %v1118_v41 = vpop.eup %1117 }
 0x214   :  { %v725_v44 = vmul.f32 1.442695, %v1622_v40  ;;  %v748_v42 = vsel %vm1320_vm2, %v1118_v41, 0.0 }
 0x215   :  { %795 = vadd.xlane.f32.xlu1 %v748_v42 }
 0x216   :  { %1125 = vpow2.f32 %v725_v44 }
 0x217   :  { %v1120_v53 = vpop.eup %1119 }
 0x218   :  { %v749_v47 = vsel %vm1320_vm2, %v1120_v53, 0.0 }
 0x219   :  { %797 = vadd.xlane.f32.xlu0 %v749_v47 }
 0x21b   :  { %v1122_v48 = vpop.eup %1121 }
 0x21c   :  { %v750_v50 = vsel %vm1320_vm2, %v1122_v48, 0.0 }
 0x21d   :  { %799 = vadd.xlane.f32.xlu1 %v750_v50 }
 0x21f   :  { %v1124_v60 = vpop.eup %1123 }
 0x220   :  { %v751_v49 = vsel %vm1320_vm2, %v1124_v60, 0.0 }
 0x221   :  { %801 = vadd.xlane.f32.xlu0 %v751_v49 }
 0x223   :  { %v1126_v54 = vpop.eup %1125 }
 0x224   :  { %v752_v55 = vsel %vm1320_vm2, %v1126_v54, 0.0 }
 0x225   :  { %803 = vadd.xlane.f32.xlu1 %v752_v55 }
 0x24a   :  { %v754_v56 = vpop.xlane.xlu0 %753 }
 0x24b   :  { %1127 = vlog2.f32 %v754_v56 }
 0x24e   :  { %v756_v57 = vpop.xlane.xlu1 %755 }
 0x24f   :  { %1129 = vlog2.f32 %v756_v57 }
 0x252   :  { %v758_v61 = vpop.xlane.xlu0 %757 }
 0x253   :  { %1131 = vlog2.f32 %v758_v61 }
 0x256   :  { %v760_v63 = vpop.xlane.xlu1 %759 }
 0x257   :  { %1133 = vlog2.f32 %v760_v63 }
 0x258   :  { %v1128_v62 = vpop.eup %1127 }
 0x259   :  { %v806_v1 = vmul.f32 0.6931472, %v1128_v62 }
 0x25a   :  { %v762_v7 = vpop.xlane.xlu0 %761 }
 0x25b   :  { %v857_v10 = vsub.f32 %v1480_v2, %v806_v1  ;;  %1135 = vlog2.f32 %v762_v7 }
 0x25c   :  { %v1130_v6 = vpop.eup %1129 }
 0x25d   :  { %v883_v11 = vsel %vm1320_vm2, %v857_v10, 0.0  ;;  %v808_v16 = vmul.f32 0.6931472, %v1130_v6 }
 0x25e   :  { %909 = vst [vmem:[#allocation7] sm:$0xff] %v883_v11  ;;  %v764_v17 = vpop.xlane.xlu1 %763 }
 0x25f   :  { %v858_v13 = vsub.f32 %v1484_v5, %v808_v16  ;;  %1137 = vlog2.f32 %v764_v17 }
 0x260   :  { %v1132_v18 = vpop.eup %1131 }
 0x261   :  { %v884_v20 = vsel %vm1320_vm2, %v858_v13, 0.0  ;;  %v810_v23 = vmul.f32 0.6931472, %v1132_v18 }
 0x262   :  { %910 = vst [vmem:[#allocation7 + $0x8] sm:$0xff] %v884_v20  ;;  %v766_v21 = vpop.xlane.xlu0 %765 }
 0x263   :  { %v859_v2 = vsub.f32 %v1488_v0, %v810_v23  ;;  %1139 = vlog2.f32 %v766_v21 }
 0x264   :  { %v1134_v27 = vpop.eup %1133 }
 0x265   :  { %v885_v29 = vsel %vm1320_vm2, %v859_v2, 0.0  ;;  %v812_v32 = vmul.f32 0.6931472, %v1134_v27 }
 0x266   :  { %911 = vst [vmem:[#allocation7 + $0x10] sm:$0xff] %v885_v29  ;;  %v768_v28 = vpop.xlane.xlu1 %767 }
 0x267   :  { %v860_v5 = vsub.f32 %v1492_v9, %v812_v32  ;;  %1141 = vlog2.f32 %v768_v28 }
 0x268   :  { %v1136_v36 = vpop.eup %1135 }
 0x269   :  { %v886_v34 = vsel %vm1320_vm2, %v860_v5, 0.0  ;;  %v814_v38 = vmul.f32 0.6931472, %v1136_v36 }
 0x26a   :  { %912 = vst [vmem:[#allocation7 + $0x18] sm:$0xff] %v886_v34  ;;  %v770_v35 = vpop.xlane.xlu0 %769 }
 0x26b   :  { %v861_v0 = vsub.f32 %v1496_v14, %v814_v38  ;;  %1143 = vlog2.f32 %v770_v35 }
 0x26c   :  { %v1138_v45 = vpop.eup %1137 }
 0x26d   :  { %v887_v41 = vsel %vm1320_vm2, %v861_v0, 0.0  ;;  %v816_v44 = vmul.f32 0.6931472, %v1138_v45 }
 0x26e   :  { %913 = vst [vmem:[#allocation7 + $0x20] sm:$0xff] %v887_v41  ;;  %v772_v42 = vpop.xlane.xlu1 %771 }
 0x26f   :  { %v862_v9 = vsub.f32 %v1502_v24, %v816_v44  ;;  %1145 = vlog2.f32 %v772_v42 }
 0x270   :  { %v1140_v53 = vpop.eup %1139 }
 0x271   :  { %v888_v47 = vsel %vm1320_vm2, %v862_v9, 0.0  ;;  %v818_v48 = vmul.f32 0.6931472, %v1140_v53 }
 0x272   :  { %914 = vst [vmem:[#allocation7 + $0x28] sm:$0xff] %v888_v47  ;;  %v774_v50 = vpop.xlane.xlu0 %773 }
 0x273   :  { %v863_v14 = vsub.f32 %v1508_v30, %v818_v48  ;;  %1147 = vlog2.f32 %v774_v50 }
 0x274   :  { %v1142_v60 = vpop.eup %1141 }
 0x275   :  { %v889_v49 = vsel %vm1320_vm2, %v863_v14, 0.0  ;;  %v820_v54 = vmul.f32 0.6931472, %v1142_v60 }
 0x276   :  { %915 = vst [vmem:[#allocation7 + $0x30] sm:$0xff] %v889_v49  ;;  %v776_v55 = vpop.xlane.xlu1 %775 }
 0x277   :  { %v864_v24 = vsub.f32 %v1514_v37, %v820_v54  ;;  %1149 = vlog2.f32 %v776_v55 }
 0x278   :  { %v1144_v56 = vpop.eup %1143 }
 0x279   :  { %v890_v57 = vsel %vm1320_vm2, %v864_v24, 0.0  ;;  %v822_v61 = vmul.f32 0.6931472, %v1144_v56 }
 0x27a   :  { %916 = vst [vmem:[#allocation7 + $0x38] sm:$0xff] %v890_v57  ;;  %v778_v63 = vpop.xlane.xlu0 %777 }
 0x27b   :  { %v865_v30 = vsub.f32 %v1520_v43, %v822_v61  ;;  %1151 = vlog2.f32 %v778_v63 }
 0x27c   :  { %v1146_v62 = vpop.eup %1145 }
 0x27d   :  { %v891_v1 = vsel %vm1320_vm2, %v865_v30, 0.0  ;;  %v824_v7 = vmul.f32 0.6931472, %v1146_v62 }
 0x27e   :  { %917 = vst [vmem:[#allocation7 + $0x40] sm:$0xff] %v891_v1  ;;  %v780_v10 = vpop.xlane.xlu1 %779 }
 0x27f   :  { %v866_v37 = vsub.f32 %v1526_v51, %v824_v7  ;;  %1153 = vlog2.f32 %v780_v10 }
 0x280   :  { %v1148_v6 = vpop.eup %1147 }
 0x281   :  { %v892_v11 = vsel %vm1320_vm2, %v866_v37, 0.0  ;;  %v826_v16 = vmul.f32 0.6931472, %v1148_v6 }
 0x282   :  { %918 = vst [vmem:[#allocation7 + $0x48] sm:$0xff] %v892_v11  ;;  %v782_v17 = vpop.xlane.xlu0 %781 }
 0x283   :  { %v867_v43 = vsub.f32 %v1532_v58, %v826_v16  ;;  %1155 = vlog2.f32 %v782_v17 }
 0x284   :  { %v1150_v13 = vpop.eup %1149 }
 0x285   :  { %v893_v18 = vsel %vm1320_vm2, %v867_v43, 0.0  ;;  %v828_v20 = vmul.f32 0.6931472, %v1150_v13 }
 0x286   :  { %919 = vst [vmem:[#allocation7 + $0x50] sm:$0xff] %v893_v18  ;;  %v784_v23 = vpop.xlane.xlu1 %783 }
 0x287   :  { %v868_v51 = vsub.f32 %v1538_v4, %v828_v20  ;;  %1157 = vlog2.f32 %v784_v23 }
 0x288   :  { %v1152_v21 = vpop.eup %1151 }
 0x289   :  { %v894_v2 = vsel %vm1320_vm2, %v868_v51, 0.0  ;;  %v830_v27 = vmul.f32 0.6931472, %v1152_v21 }
 0x28a   :  { %920 = vst [vmem:[#allocation7 + $0x58] sm:$0xff] %v894_v2  ;;  %v786_v29 = vpop.xlane.xlu0 %785 }
 0x28b   :  { %v869_v58 = vsub.f32 %v1544_v12, %v830_v27  ;;  %1159 = vlog2.f32 %v786_v29 }
 0x28c   :  { %v1154_v32 = vpop.eup %1153 }
 0x28d   :  { %v895_v28 = vsel %vm1320_vm2, %v869_v58, 0.0  ;;  %v832_v5 = vmul.f32 0.6931472, %v1154_v32 }
 0x28e   :  { %921 = vst [vmem:[#allocation7 + $0x60] sm:$0xff] %v895_v28  ;;  %v788_v36 = vpop.xlane.xlu1 %787 }
 0x28f   :  { %v870_v4 = vsub.f32 %v1550_v19, %v832_v5  ;;  %1161 = vlog2.f32 %v788_v36 }
 0x290   :  { %v1156_v34 = vpop.eup %1155 }
 0x291   :  { %v896_v38 = vsel %vm1320_vm2, %v870_v4, 0.0  ;;  %v834_v35 = vmul.f32 0.6931472, %v1156_v34 }
 0x292   :  { %922 = vst [vmem:[#allocation7 + $0x68] sm:$0xff] %v896_v38  ;;  %v790_v0 = vpop.xlane.xlu0 %789 }
 0x293   :  { %v871_v12 = vsub.f32 %v1556_v26, %v834_v35  ;;  %1163 = vlog2.f32 %v790_v0 }
 0x294   :  { %v1158_v45 = vpop.eup %1157 }
 0x295   :  { %v897_v41 = vsel %vm1320_vm2, %v871_v12, 0.0  ;;  %v836_v44 = vmul.f32 0.6931472, %v1158_v45 }
 0x296   :  { %923 = vst [vmem:[#allocation7 + $0x70] sm:$0xff] %v897_v41  ;;  %v792_v42 = vpop.xlane.xlu1 %791 }
 0x297   :  { %v872_v19 = vsub.f32 %v1562_v31, %v836_v44  ;;  %1165 = vlog2.f32 %v792_v42 }
 0x298   :  { %v1160_v9 = vpop.eup %1159 }
 0x299   :  { %v898_v53 = vsel %vm1320_vm2, %v872_v19, 0.0  ;;  %v838_v47 = vmul.f32 0.6931472, %v1160_v9 }
 0x29a   :  { %924 = vst [vmem:[#allocation7 + $0x78] sm:$0xff] %v898_v53  ;;  %v794_v48 = vpop.xlane.xlu0 %793 }
 0x29b   :  { %v873_v26 = vsub.f32 %v1568_v39, %v838_v47  ;;  %1167 = vlog2.f32 %v794_v48 }
 0x29c   :  { %v1162_v50 = vpop.eup %1161 }
 0x29d   :  { %v899_v14 = vsel %vm1320_vm2, %v873_v26, 0.0  ;;  %v840_v60 = vmul.f32 0.6931472, %v1162_v50 }
 0x29e   :  { %925 = vst [vmem:[#allocation7 + $0x80] sm:$0xff] %v899_v14  ;;  %v796_v49 = vpop.xlane.xlu1 %795 }
 0x29f   :  { %v874_v31 = vsub.f32 %v1574_v46, %v840_v60  ;;  %1169 = vlog2.f32 %v796_v49 }
 0x2a0   :  { %v1164_v54 = vpop.eup %1163 }
 0x2a1   :  { %v900_v55 = vsel %vm1320_vm2, %v874_v31, 0.0  ;;  %v842_v24 = vmul.f32 0.6931472, %v1164_v54 }
 0x2a2   :  { %926 = vst [vmem:[#allocation7 + $0x88] sm:$0xff] %v900_v55  ;;  %v798_v56 = vpop.xlane.xlu0 %797 }
 0x2a3   :  { %v875_v39 = vsub.f32 %v1580_v52, %v842_v24  ;;  %1171 = vlog2.f32 %v798_v56 }
 0x2a4   :  { %v1166_v57 = vpop.eup %1165 }
 0x2a5   :  { %v901_v61 = vsel %vm1320_vm2, %v875_v39, 0.0  ;;  %v844_v63 = vmul.f32 0.6931472, %v1166_v57 }
 0x2a6   :  { %927 = vst [vmem:[#allocation7 + $0x90] sm:$0xff] %v901_v61  ;;  %v800_v30 = vpop.xlane.xlu1 %799 }
 0x2a7   :  { %v876_v46 = vsub.f32 %v1586_v59, %v844_v63  ;;  %1173 = vlog2.f32 %v800_v30 }
 0x2a8   :  { %v1168_v62 = vpop.eup %1167 }
 0x2a9   :  { %v902_v1 = vsel %vm1320_vm2, %v876_v46, 0.0  ;;  %v846_v7 = vmul.f32 0.6931472, %v1168_v62 }
 0x2aa   :  { %928 = vst [vmem:[#allocation7 + $0x98] sm:$0xff] %v902_v1  ;;  %v802_v10 = vpop.xlane.xlu0 %801 }
 0x2ab   :  { %v877_v52 = vsub.f32 %v1592_v3, %v846_v7  ;;  %1175 = vlog2.f32 %v802_v10 }
 0x2ac   :  { %v1170_v37 = vpop.eup %1169 }
 0x2ad   :  { %v903_v6 = vsel %vm1320_vm2, %v877_v52, 0.0  ;;  %v848_v11 = vmul.f32 0.6931472, %v1170_v37 }
 0x2ae   :  { %929 = vst [vmem:[#allocation7 + $0xa0] sm:$0xff] %v903_v6  ;;  %v804_v16 = vpop.xlane.xlu1 %803 }
 0x2af   :  { %v878_v59 = vsub.f32 %v1598_v15, %v848_v11  ;;  %1177 = vlog2.f32 %v804_v16 }
 0x2b0   :  { %v1172_v17 = vpop.eup %1171 }
 0x2b1   :  { %v904_v43 = vsel %vm1320_vm2, %v878_v59, 0.0  ;;  %v850_v13 = vmul.f32 0.6931472, %v1172_v17 }
 0x2b2   :  { %930 = vst [vmem:[#allocation7 + $0xa8] sm:$0xff] %v904_v43 }
 0x2b3   :  { %v879_v18 = vsub.f32 %v1604_v22, %v850_v13 }
 0x2b4   :  { %v1174_v3 = vpop.eup %1173 }
 0x2b5   :  { %v905_v20 = vsel %vm1320_vm2, %v879_v18, 0.0  ;;  %v852_v23 = vmul.f32 0.6931472, %v1174_v3 }
 0x2b6   :  { %931 = vst [vmem:[#allocation7 + $0xb0] sm:$0xff] %v905_v20 }
 0x2b7   :  { %v880_v51 = vsub.f32 %v1610_v25, %v852_v23 }
 0x2b8   :  { %v1176_v21 = vpop.eup %1175 }
 0x2b9   :  { %v906_v15 = vsel %vm1320_vm2, %v880_v51, 0.0  ;;  %v854_v2 = vmul.f32 0.6931472, %v1176_v21 }
 0x2ba   :  { %932 = vst [vmem:[#allocation7 + $0xb8] sm:$0xff] %v906_v15 }
 0x2bb   :  { %v881_v27 = vsub.f32 %v1616_v33, %v854_v2 }
 0x2bc   :  { %v1178_v29 = vpop.eup %1177 }
 0x2bd   :  { %v907_v22 = vsel %vm1320_vm2, %v881_v27, 0.0  ;;  %v856_v58 = vmul.f32 0.6931472, %v1178_v29 }
 0x2be   :  { %933 = vst [vmem:[#allocation7 + $0xc0] sm:$0xff] %v907_v22 }
 0x2bf   :  { %v882_v32 = vsub.f32 %v1622_v40, %v856_v58 }
 0x2c1   :  { %v908_v25 = vsel %vm1320_vm2, %v882_v32, 0.0 }
 0x2c2   :  { %934 = vst [vmem:[#allocation7 + $0xc8] sm:$0xff] %v908_v25 }
 0x2c3   :  { %1230 = shalt.err (!%p1227_p0)
}
 0x2c4   :  { %946 = dma.vmem_to_hbm [thread:$0]  %s941_s26, 3328, %s1722_s3, [#allocation4], %s1249_s22, %s1249_s22, %s1250_s23  }
 0x2c5   :  { %1243 = dma.done.wait [#allocation4], 3328  }
 0x2c6   :  { %1244 = vsyncadd [#allocation4], 4294963968 }
 0x2c7   :  { %950 = vsyncpa [#allocation3], 1 }
 0x2c8   :  { %951 = vsyncpa [#allocation6], 1 }
 0x2c9   :  { %952 = vsyncpa [#allocation4], 1 }

</bundles_post_ra>
